<compile_context>
chip_gen: v7x
topology: tpu7x:2x2x1
jax: 0.10.0
libtpu: 0.0.40
codegen_flags: <defaults>
</compile_context>

<pallas_src>
import numpy as np
import jax
import jax.numpy as jnp
from jax.experimental import pallas as pl
from jax.experimental.pallas import tpu as pltpu

EPS = 1e-5
LANES = 128
ROW_ALIGN = 32            # keeps int8 mask tiles natively (32, 128) aligned
TARGET_TILE_ROWS = 2048   # 2048 x 128 x 4 B = 1 MiB per f32 tile buffer

SUPPORTED_MASK_TYPES = {"threshold_plus", "threshold_minus", "mean_plus"}


def _round_up(x, m):
    return (x + m - 1) // m * m


# ---------------------------------------------------------------------------
# Pallas kernels
# ---------------------------------------------------------------------------
def _stats_kernel_masked(x_ref, m_ref, cnt_ref, mu_ref, m2_ref):
    """Streaming per-lane (count, mean, M2) with an int8 foreground mask.

    Grid: (groups, row_tiles).  The (1,1,128) accumulators are resident VMEM
    outputs across the 'arbitrary' row-tile axis.  Per-tile mean shift plus a
    Chan-style combination avoids E[x^2]-mean^2 cancellation in f32.
    """
    p = pl.program_id(1)

    @pl.when(p == 0)
    def _init():
        cnt_ref[...] = jnp.zeros_like(cnt_ref)
        mu_ref[...] = jnp.zeros_like(mu_ref)
        m2_ref[...] = jnp.zeros_like(m2_ref)

    x = x_ref[0]                                    # (tile_rows, 128) f32
    m = m_ref[0].astype(jnp.float32)                # int8 {0,1} -> f32
    c_t = jnp.sum(m, axis=0, keepdims=True)         # (1, 128)
    s_t = jnp.sum(x * m, axis=0, keepdims=True)
    mean_t = s_t / jnp.maximum(c_t, 1.0)
    d = (x - mean_t) * m
    m2_t = jnp.sum(d * d, axis=0, keepdims=True)

    c0 = cnt_ref[0]
    mu0 = mu_ref[0]
    c1 = c0 + c_t
    delta = mean_t - mu0
    w = c_t / jnp.maximum(c1, 1.0)
    cnt_ref[0] = c1
    mu_ref[0] = mu0 + delta * w
    m2_ref[0] = m2_ref[0] + m2_t + (delta * delta) * (c0 * w)


def _stats_kernel_nomask(x_ref, mu_ref, m2_ref):
    """No-mask fast path: no mask stream, per-lane count is a static constant."""
    p = pl.program_id(1)

    @pl.when(p == 0)
    def _init():
        mu_ref[...] = jnp.zeros_like(mu_ref)
        m2_ref[...] = jnp.zeros_like(m2_ref)

    x = x_ref[0]
    tile_rows = x.shape[0]
    c_t = jnp.float32(tile_rows)
    mean_t = jnp.sum(x, axis=0, keepdims=True) * (1.0 / c_t)
    d = x - mean_t
    m2_t = jnp.sum(d * d, axis=0, keepdims=True)

    c0 = (p * tile_rows).astype(jnp.float32)        # rows already accumulated
    mu0 = mu_ref[0]
    c1 = c0 + c_t
    delta = mean_t - mu0
    w = c_t / c1
    mu_ref[0] = mu0 + delta * w
    m2_ref[0] = m2_ref[0] + m2_t + (delta * delta) * (c0 * w)


def _normalise_kernel(x_ref, mean_ref, inv_ref, o_ref):
    # The reciprocal is hoisted to the wrapper (one scalar per slice); this is a
    # pure subtract/multiply VPU epilogue under the DMA, lane-dense in and out.
    o_ref[0] = (x_ref[0] - mean_ref[0]) * inv_ref[0]


def _threshold_gt_kernel(x_ref, thr_ref, o_ref):
    o_ref[0] = (x_ref[0] > thr_ref[0]).astype(jnp.int8)


def _threshold_lt_kernel(x_ref, thr_ref, o_ref):
    o_ref[0] = (x_ref[0] < thr_ref[0]).astype(jnp.int8)


# ---------------------------------------------------------------------------
# pallas_call wrappers
# ---------------------------------------------------------------------------
def _tile_rows(total_rows):
    # _lane_pack guarantees total_rows is a multiple of this value.
    return min(TARGET_TILE_ROWS, total_rows)


def _stats_call(xp, mp):
    """xp: (G, R, 128) f32; mp: (G or 1, R, 128) int8 or None.
    Returns per-lane (cnt, mu, m2), each of shape (G, 128) f32."""
    G, R, _ = xp.shape
    tr = _tile_rows(R)
    P = R // tr
    stat_shape = jax.ShapeDtypeStruct((G, 1, LANES), jnp.float32)
    stat_spec = pl.BlockSpec((1, 1, LANES), lambda g, p: (g, 0, 0))
    x_spec = pl.BlockSpec((1, tr, LANES), lambda g, p: (g, p, 0))
    params = pltpu.CompilerParams(dimension_semantics=("parallel", "arbitrary"))

    if mp is None:
        cost = pl.CostEstimate(flops=6 * xp.size, transcendentals=0,
                               bytes_accessed=4 * xp.size + 8 * G * LANES)
        mu, m2 = pl.pallas_call(
            _stats_kernel_nomask,
            out_shape=(stat_shape, stat_shape),
            grid=(G, P),
            in_specs=[x_spec],
            out_specs=(stat_spec, stat_spec),
            compiler_params=params,
            cost_estimate=cost,
        )(xp)
        cnt = jnp.full((G, LANES), float(R), dtype=jnp.float32)
        return cnt, mu.reshape(G, LANES), m2.reshape(G, LANES)

    if mp.shape[0] == 1 and G > 1:
        # shared validity mask, broadcast over the slice axis via the index_map
        m_spec = pl.BlockSpec((1, tr, LANES), lambda g, p: (0, p, 0))
    else:
        m_spec = pl.BlockSpec((1, tr, LANES), lambda g, p: (g, p, 0))
    cost = pl.CostEstimate(flops=10 * xp.size, transcendentals=0,
                           bytes_accessed=4 * xp.size + mp.size + 12 * G * LANES)
    cnt, mu, m2 = pl.pallas_call(
        _stats_kernel_masked,
        out_shape=(stat_shape, stat_shape, stat_shape),
        grid=(G, P),
        in_specs=[x_spec, m_spec],
        out_specs=(stat_spec, stat_spec, stat_spec),
        compiler_params=params,
        cost_estimate=cost,
    )(xp, mp)
    return cnt.reshape(G, LANES), mu.reshape(G, LANES), m2.reshape(G, LANES)


def _normalise_call(xp, mean_lanes, inv_lanes):
    G, R, _ = xp.shape
    tr = _tile_rows(R)
    P = R // tr
    x_spec = pl.BlockSpec((1, tr, LANES), lambda g, p: (g, p, 0))
    s_spec = pl.BlockSpec((1, 1, LANES), lambda g, p: (g, 0, 0))
    cost = pl.CostEstimate(flops=2 * xp.size, transcendentals=0,
                           bytes_accessed=8 * xp.size + 8 * G * LANES)
    return pl.pallas_call(
        _normalise_kernel,
        out_shape=jax.ShapeDtypeStruct(xp.shape, jnp.float32),
        grid=(G, P),
        in_specs=[x_spec, s_spec, s_spec],
        out_specs=pl.BlockSpec((1, tr, LANES), lambda g, p: (g, p, 0)),
        compiler_params=pltpu.CompilerParams(
            dimension_semantics=("parallel", "parallel")),
        cost_estimate=cost,
    )(xp, mean_lanes, inv_lanes)


def _threshold_call(xp, thr_lanes, greater):
    G, R, _ = xp.shape
    tr = _tile_rows(R)
    P = R // tr
    kern = _threshold_gt_kernel if greater else _threshold_lt_kernel
    cost = pl.CostEstimate(flops=xp.size, transcendentals=0,
                           bytes_accessed=5 * xp.size)
    return pl.pallas_call(
        kern,
        out_shape=jax.ShapeDtypeStruct(xp.shape, jnp.int8),
        grid=(G, P),
        in_specs=[pl.BlockSpec((1, tr, LANES), lambda g, p: (g, p, 0)),
                  pl.BlockSpec((1, 1, LANES), lambda g, p: (g, 0, 0))],
        out_specs=pl.BlockSpec((1, tr, LANES), lambda g, p: (g, p, 0)),
        compiler_params=pltpu.CompilerParams(
            dimension_semantics=("parallel", "parallel")),
        cost_estimate=cost,
    )(xp, thr_lanes)


# ---------------------------------------------------------------------------
# Layout helpers / statistics combination
# ---------------------------------------------------------------------------
def _lane_pack(flat):
    """(G, L) -> zero-padded (G, R, 128) with R a multiple of the row tile."""
    G, L = flat.shape
    rows_needed = max(1, -(-L // LANES))
    tile_rows = min(TARGET_TILE_ROWS, _round_up(rows_needed, ROW_ALIGN))
    R = _round_up(rows_needed, tile_rows)
    pad = R * LANES - L
    if pad:
        flat = jnp.pad(flat, ((0, 0), (0, pad)))
    return flat.reshape(G, R, LANES)


def _combine_lane_stats(cnt, mu, m2, lane_groups):
    """Combine per-lane partials; lane l of group g belongs to slice
    g*lane_groups + (l % lane_groups).  Returns flat per-slice (C, MU, M2)."""
    G = cnt.shape[0]
    k = LANES // lane_groups
    cnt = cnt.reshape(G, k, lane_groups)
    mu = mu.reshape(G, k, lane_groups)
    m2 = m2.reshape(G, k, lane_groups)
    C = jnp.sum(cnt, axis=1)
    MU = jnp.sum(cnt * mu, axis=1) / jnp.maximum(C, 1.0)
    M2 = jnp.sum(m2, axis=1) + jnp.sum(cnt * jnp.square(mu - MU[:, None, :]), axis=1)
    return C.reshape(-1), MU.reshape(-1), M2.reshape(-1)


def _foreground_stats(xp, mp, lane_groups, valid_len):
    """Per-slice masked mean and 1/max(std, eps); cnt==0 slices are guarded."""
    G, R, _ = xp.shape
    if mp is None and R * LANES != valid_len:
        # Padded and no user mask: synthesize a shared int8 validity mask once
        # (1/4 of the traffic an f32 mask would cost; only hit for odd sizes).
        mp = (jnp.arange(R * LANES, dtype=jnp.int32) < valid_len
              ).astype(jnp.int8).reshape(1, R, LANES)
    cnt, mu, m2 = _stats_call(xp, mp)
    C, MU, M2 = _combine_lane_stats(cnt, mu, m2, lane_groups)
    var = M2 / jnp.maximum(C, 1.0)                  # population variance (ddof=0)
    std = jnp.sqrt(jnp.maximum(var, 0.0))
    inv = 1.0 / jnp.maximum(std, EPS)               # scalar reciprocal, hoisted
    return C, MU, inv


def _apply_normalise(xp, mean_slices, inv_slices, lane_groups):
    G = xp.shape[0]
    k = LANES // lane_groups
    mean_lanes = jnp.tile(mean_slices.reshape(G, 1, lane_groups), (1, 1, k))
    inv_lanes = jnp.tile(inv_slices.reshape(G, 1, lane_groups), (1, 1, k))
    return _normalise_call(xp, mean_lanes, inv_lanes)


def _binary_dilation_cross(mask, iterations=2):
    """scipy.ndimage.binary_dilation with the default 6-connected structure."""
    for _ in range(iterations):
        p = jnp.pad(mask, 1)
        mask = (mask
                | p[2:, 1:-1, 1:-1] | p[:-2, 1:-1, 1:-1]
                | p[1:-1, 2:, 1:-1] | p[1:-1, :-2, 1:-1]
                | p[1:-1, 1:-1, 2:] | p[1:-1, 1:-1, :-2])
    return mask


# ---------------------------------------------------------------------------
# BinaryMaskingLayer (thresholding via the Pallas kernel)
# ---------------------------------------------------------------------------
class BinaryMaskingLayer:

    def __init__(self, type_str='otsu_plus', multimod_fusion='or', threshold=0.0):
        # TODO(synk): 'otsu_plus' (skimage Otsu threshold) is not implemented;
        # only SUPPORTED_MASK_TYPES of the reference are available.
        self.type_str = type_str
        self.multimod_fusion = multimod_fusion
        self.threshold = threshold

    def _make_mask_3d(self, image):
        assert image.ndim == 3
        assert self.type_str in SUPPORTED_MASK_TYPES
        x = jnp.asarray(image, jnp.float32)
        flat = x.reshape(1, -1)
        valid_len = flat.shape[1]
        xp = _lane_pack(flat)
        if self.type_str == 'mean_plus':
            _, mu, _ = _foreground_stats(xp, None, 1, valid_len)
            thr = mu.reshape(())
            greater = True
        elif self.type_str == 'threshold_plus':
            thr = jnp.float32(self.threshold)
            greater = True
        else:  # 'threshold_minus'
            thr = jnp.float32(self.threshold)
            greater = False
        thr_lanes = jnp.full((1, 1, LANES), thr, dtype=jnp.float32)
        mi8 = _threshold_call(xp, thr_lanes, greater)
        mask = mi8.reshape(1, -1)[:, :valid_len].reshape(x.shape).astype(bool)
        mask = _binary_dilation_cross(mask, iterations=2)
        # TODO(synk): scipy.ndimage fill_holes (border flood-fill) has no clean
        # Pallas/TPU equivalent; holes are left unfilled here.
        if not bool(jnp.any(mask)):
            raise ValueError('no foreground based on the specified combination '
                             'parameters, please choose another `mask_type`')
        return mask

    def forward(self, image):
        image = jnp.asarray(image, jnp.float32)
        if image.ndim == 3:
            return self._make_mask_3d(image)
        if image.ndim == 5:
            T, M = int(image.shape[3]), int(image.shape[4])
            mod_to_mask = [m for m in range(M)
                           if bool(jnp.any(image[..., :, m] != 0))]
            mask = jnp.zeros(image.shape, dtype=bool)
            mod_mask = None
            for mod in mod_to_mask:
                stacked = jnp.stack(
                    [self._make_mask_3d(image[..., t, mod]) for t in range(T)],
                    axis=-1)                                    # (D, H, W, T)
                if self.multimod_fusion == 'or':
                    mod_mask = stacked if mod_mask is None else jnp.logical_or(mod_mask, stacked)
                elif self.multimod_fusion == 'and':
                    mod_mask = stacked if mod_mask is None else jnp.logical_and(mod_mask, stacked)
            for mod in mod_to_mask:
                mask = mask.at[..., mod].set(mod_mask)
            return mask
        raise ValueError('unknown input format')

    __call__ = forward


# ---------------------------------------------------------------------------
# MeanVarNormalisationLayer (masked whitening via the Pallas kernels)
# ---------------------------------------------------------------------------
class MeanVarNormalisationLayer:

    def __init__(self, image_name='image', binary_masking_func=None):
        self.image_name = image_name
        self.binary_masking_func = binary_masking_func

    def forward(self, image, mask=None):
        x = jnp.asarray(image, dtype=jnp.float32)
        if x.ndim not in (3, 5):
            raise ValueError('unsupported input rank: %d' % x.ndim)

        if mask is None and self.binary_masking_func is not None:
            mask = self.binary_masking_func(x)
        if mask is not None:
            mask_b = jnp.asarray(mask).astype(bool)
            mask_i8 = mask_b.astype(jnp.int8)     # 4x less mask HBM traffic than f32
        else:
            mask_b = None
            mask_i8 = None

        transposed = False
        if x.ndim == 3:
            lane_groups = 1
            flat = x.reshape(1, -1)
            mflat = None if mask_i8 is None else mask_i8.reshape(1, -1)
        else:
            D, H, W, T, M = x.shape
            S = T * M
            if LANES % S == 0:
                # Zero-copy layout: flat index % (T*M) identifies the (t, m)
                # slice and 128 % (T*M) == 0, so lane l always belongs to slice
                # l % (T*M).  No HBM transposes; stats are grouped per lane.
                lane_groups = S
                flat = x.reshape(1, -1)
                mflat = None if mask_i8 is None else mask_i8.reshape(1, -1)
            else:
                # TODO(synk): when T*M does not divide 128 a zero-copy layout is
                # lane-sparse; fall back to one transpose each way so the kernel
                # still streams lane-dense (rows, 128) tiles.
                transposed = True
                lane_groups = 1
                flat = jnp.transpose(x, (3, 4, 0, 1, 2)).reshape(S, -1)
                mflat = (None if mask_i8 is None else
                         jnp.transpose(mask_i8, (3, 4, 0, 1, 2)).reshape(S, -1))

        valid_len = flat.shape[1]
        xp = _lane_pack(flat)
        mp = None if mflat is None else _lane_pack(mflat)

        _, mean_s, inv_s = _foreground_stats(xp, mp, lane_groups, valid_len)
        outp = _apply_normalise(xp, mean_s, inv_s, lane_groups)
        out_flat = outp.reshape(flat.shape[0], -1)[:, :valid_len]

        if not transposed:
            out = out_flat.reshape(x.shape)
        else:
            D, H, W, T, M = x.shape
            out = jnp.transpose(out_flat.reshape(T, M, D, H, W), (2, 3, 4, 0, 1))

        if mask_b is None:
            mask_b = jnp.ones(x.shape, dtype=bool)
        return out, mask_b

    __call__ = forward


# ---------------------------------------------------------------------------
# Numpy references for self-checking
# ---------------------------------------------------------------------------
def _np_whiten(img, msk):
    img64 = np.asarray(img, np.float64)
    msk = np.asarray(msk, bool)
    sel = img64[msk]
    mean = sel.mean()
    std = sel.std()  # ddof=0, like numpy.ma.std
    return ((np.asarray(img, np.float32) - mean) / max(std, 1e-5)).astype(np.float32)


def _np_norm_forward(image, mask):
    image = np.asarray(image, np.float32)
    mask = np.asarray(mask, bool)
    if image.ndim == 3:
        return _np_whiten(image, mask)
    out = np.empty_like(image, dtype=np.float32)
    for m in range(image.shape[4]):
        for t in range(image.shape[3]):
            out[..., t, m] = _np_whiten(image[..., t, m], mask[..., t, m])
    return out


def _np_dilate(mask, iterations=2):
    mask = np.asarray(mask, bool)
    for _ in range(iterations):
        p = np.pad(mask, 1)
        mask = (mask
                | p[2:, 1:-1, 1:-1] | p[:-2, 1:-1, 1:-1]
                | p[1:-1, 2:, 1:-1] | p[1:-1, :-2, 1:-1]
                | p[1:-1, 1:-1, 2:] | p[1:-1, 1:-1, :-2])
    return mask


def _np_make_mask_3d(img, type_str, threshold):
    img = np.asarray(img, np.float32)
    if type_str == 'mean_plus':
        thr = img.mean()
    else:
        thr = threshold
    if type_str == 'threshold_minus':
        m = img < thr
    else:
        m = img > thr
    return _np_dilate(m, 2)


# ---------------------------------------------------------------------------
# Self-test
# ---------------------------------------------------------------------------
if __name__ == "__main__":
    key = jax.random.PRNGKey(0)
    k1, k2, k3, k4, k5 = jax.random.split(key, 5)

    norm = MeanVarNormalisationLayer("image")

    # 1) 3-D, no mask, voxel count multiple of 32*128 -> pure no-mask fast path
    x3 = jax.random.normal(k1, (16, 16, 16), jnp.float32) * 3.0 - 1.0
    out3, m3 = norm(x3)
    out3 = jax.block_until_ready(out3)
    ref3 = _np_norm_forward(np.asarray(x3), np.ones(x3.shape, bool))
    assert np.allclose(np.asarray(out3), ref3, atol=1e-4, rtol=1e-4)
    assert m3.dtype == jnp.bool_

    # 2) 3-D, odd voxel count -> padding + synthesized int8 validity mask
    x3b = jax.random.normal(k2, (7, 9, 11), jnp.float32) * 2.0 + 5.0
    out3b, _ = norm(x3b)
    out3b = jax.block_until_ready(out3b)
    ref3b = _np_norm_forward(np.asarray(x3b), np.ones(x3b.shape, bool))
    assert np.allclose(np.asarray(out3b), ref3b, atol=1e-4, rtol=1e-4)

    # 3) 5-D, T*M=6 (transposed per-slice path), explicit foreground mask
    x5 = jax.random.normal(k3, (8, 8, 16, 2, 3), jnp.float32) * 2.0 + 0.5
    mask5 = x5 > 0.0
    out5, m5 = norm(x5, mask5)
    out5 = jax.block_until_ready(out5)
    ref5 = _np_norm_forward(np.asarray(x5), np.asarray(mask5))
    assert np.allclose(np.asarray(out5), ref5, atol=1e-4, rtol=1e-4)
    assert m5.dtype == jnp.bool_

    # 4) 5-D, T*M=4 divides 128 -> zero-copy lane-grouped path, explicit mask
    x5b = jax.random.normal(k4, (8, 8, 16, 1, 4), jnp.float32) - 0.25
    mask5b = x5b > -0.5
    out5b, _ = norm(x5b, mask5b)
    out5b = jax.block_until_ready(out5b)
    ref5b = _np_norm_forward(np.asarray(x5b), np.asarray(mask5b))
    assert np.allclose(np.asarray(out5b), ref5b, atol=1e-4, rtol=1e-4)

    # 5) BinaryMaskingLayer, threshold_plus, 3-D: exact mask check vs numpy
    masker = BinaryMaskingLayer(type_str="threshold_plus", threshold=0.25)
    xm = jax.random.normal(k5, (8, 16, 16), jnp.float32)
    mk = jax.block_until_ready(masker(xm))
    ref_mk = _np_make_mask_3d(np.asarray(xm), "threshold_plus", 0.25)
    assert np.array_equal(np.asarray(mk), ref_mk)

    # 6) mean_plus BinaryMaskingLayer feeding the normalisation layer (5-D fusion)
    masker2 = BinaryMaskingLayer(type_str="mean_plus", multimod_fusion="or")
    norm2 = MeanVarNormalisationLayer("image", binary_masking_func=masker2)
    x5c = jax.random.normal(k1, (8, 8, 16, 2, 2), jnp.float32) * 1.5 + 0.3
    out5c, m5c = norm2(x5c)
    out5c = jax.block_until_ready(out5c)
    ref5c = _np_norm_forward(np.asarray(x5c), np.asarray(m5c))
    assert np.allclose(np.asarray(out5c), ref5c, atol=1e-4, rtol=1e-4)

    print("KERNEL_OK")
</pallas_src>

<mosaic_0001>
module attributes {stable_mosaic.version = 11 : i64} {
  func.func @_stats_kernel_nomask(%arg0: i32, %arg1: i32, %arg2: memref<1x32x128xf32, #tpu.memory_space<vmem>>, %arg3: memref<1x1x128xf32, #tpu.memory_space<vmem>>, %arg4: memref<1x1x128xf32, #tpu.memory_space<vmem>>) attributes {dimension_semantics = [#tpu.dimension_semantics<parallel>, #tpu.dimension_semantics<arbitrary>], iteration_bounds = array<i64: 1, 1>, scalar_prefetch = 0 : i64, scratch_operands = 0 : i64, tpu.core_type = #tpu.core_type<tc>, window_params = [{transform_indices = @transform_0, window_bounds = array<i64: 1, 32, 128>}, {transform_indices = @transform_1, window_bounds = array<i64: 1, 1, 128>}, {transform_indices = @transform_2, window_bounds = array<i64: 1, 1, 128>}]} {
    %c0_i32 = arith.constant 0 : i32
    %0 = arith.cmpi eq, %arg1, %c0_i32 : i32
    %1 = arith.extui %0 : i1 to i32
    %c0_i32_0 = arith.constant 0 : i32
    %2 = arith.cmpi ne, %1, %c0_i32_0 : i32
    scf.if %2 {
      %cst_20 = arith.constant 0.000000e+00 : f32
      %39 = vector.broadcast %cst_20 : f32 to vector<1x1x128xf32>
      %c0_21 = arith.constant 0 : index
      %c0_22 = arith.constant 0 : index
      %c0_23 = arith.constant 0 : index
      %40 = vector.load %arg3[%c0_21, %c0_22, %c0_23] : memref<1x1x128xf32, #tpu.memory_space<vmem>>, vector<1x1x128xf32>
      tpu.vector_store %arg3[%c0_21, %c0_22, %c0_23], %39 {strides = array<i32>} : memref<1x1x128xf32, #tpu.memory_space<vmem>>, vector<1x1x128xf32>,
      %cst_24 = arith.constant 0.000000e+00 : f32
      %41 = vector.broadcast %cst_24 : f32 to vector<1x1x128xf32>
      %c0_25 = arith.constant 0 : index
      %c0_26 = arith.constant 0 : index
      %c0_27 = arith.constant 0 : index
      %42 = vector.load %arg4[%c0_25, %c0_26, %c0_27] : memref<1x1x128xf32, #tpu.memory_space<vmem>>, vector<1x1x128xf32>
      tpu.vector_store %arg4[%c0_25, %c0_26, %c0_27], %41 {strides = array<i32>} : memref<1x1x128xf32, #tpu.memory_space<vmem>>, vector<1x1x128xf32>,
    } else {
    }
    %c0 = arith.constant 0 : index
    %c0_1 = arith.constant 0 : index
    %c0_2 = arith.constant 0 : index
    %3 = vector.load %arg2[%c0, %c0_1, %c0_2] : memref<1x32x128xf32, #tpu.memory_space<vmem>>, vector<1x32x128xf32>
    %4 = vector.shape_cast %3 : vector<1x32x128xf32> to vector<32x128xf32>
    %cst = arith.constant dense<0.000000e+00> : vector<128xf32>
    %5 = vector.multi_reduction <add>, %4, %cst [0] : vector<32x128xf32> to vector<128xf32>
    %6 = vector.shape_cast %5 : vector<128xf32> to vector<1x128xf32>
    %cst_3 = arith.constant 1.000000e+00 : f32
    %cst_4 = arith.constant 3.200000e+01 : f32
    %7 = arith.divf %cst_3, %cst_4 : f32
    %8 = vector.broadcast %7 : f32 to vector<1x128xf32>
    %9 = arith.mulf %6, %8 : vector<1x128xf32>
    %10 = vector.broadcast %9 : vector<1x128xf32> to vector<32x128xf32>
    %11 = arith.subf %4, %10 : vector<32x128xf32>
    %12 = arith.mulf %11, %11 : vector<32x128xf32>
    %cst_5 = arith.constant dense<0.000000e+00> : vector<128xf32>
    %13 = vector.multi_reduction <add>, %12, %cst_5 [0] : vector<32x128xf32> to vector<128xf32>
    %14 = vector.shape_cast %13 : vector<128xf32> to vector<1x128xf32>
    %c32_i32 = arith.constant 32 : i32
    %15 = arith.muli %arg1, %c32_i32 : i32
    %16 = arith.sitofp %15 : i32 to f32
    %c0_6 = arith.constant 0 : index
    %c0_7 = arith.constant 0 : index
    %c0_8 = arith.constant 0 : index
    %17 = vector.load %arg3[%c0_6, %c0_7, %c0_8] : memref<1x1x128xf32, #tpu.memory_space<vmem>>, vector<1x1x128xf32>
    %18 = vector.shape_cast %17 : vector<1x1x128xf32> to vector<1x128xf32>
    %cst_9 = arith.constant 3.200000e+01 : f32
    %19 = arith.addf %16, %cst_9 : f32
    %20 = arith.subf %9, %18 : vector<1x128xf32>
    %cst_10 = arith.constant 3.200000e+01 : f32
    %21 = arith.divf %cst_10, %19 : f32
    %22 = vector.broadcast %21 : f32 to vector<1x128xf32>
    %23 = arith.mulf %20, %22 : vector<1x128xf32>
    %24 = arith.addf %18, %23 : vector<1x128xf32>
    %c0_11 = arith.constant 0 : index
    %c0_12 = arith.constant 0 : index
    %c0_13 = arith.constant 0 : index
    %25 = vector.load %arg3[%c0_11, %c0_12, %c0_13] : memref<1x1x128xf32, #tpu.memory_space<vmem>>, vector<1x1x128xf32>
    %26 = vector.shape_cast %25 : vector<1x1x128xf32> to vector<1x128xf32>
    %27 = vector.shape_cast %24 : vector<1x128xf32> to vector<1x1x128xf32>
    tpu.vector_store %arg3[%c0_11, %c0_12, %c0_13], %27 {strides = array<i32>} : memref<1x1x128xf32, #tpu.memory_space<vmem>>, vector<1x1x128xf32>,
    %c0_14 = arith.constant 0 : index
    %c0_15 = arith.constant 0 : index
    %c0_16 = arith.constant 0 : index
    %28 = vector.load %arg4[%c0_14, %c0_15, %c0_16] : memref<1x1x128xf32, #tpu.memory_space<vmem>>, vector<1x1x128xf32>
    %29 = vector.shape_cast %28 : vector<1x1x128xf32> to vector<1x128xf32>
    %30 = arith.addf %29, %14 : vector<1x128xf32>
    %31 = arith.mulf %20, %20 : vector<1x128xf32>
    %32 = arith.mulf %16, %21 : f32
    %33 = vector.broadcast %32 : f32 to vector<1x128xf32>
    %34 = arith.mulf %31, %33 : vector<1x128xf32>
    %35 = arith.addf %30, %34 : vector<1x128xf32>
    %c0_17 = arith.constant 0 : index
    %c0_18 = arith.constant 0 : index
    %c0_19 = arith.constant 0 : index
    %36 = vector.load %arg4[%c0_17, %c0_18, %c0_19] : memref<1x1x128xf32, #tpu.memory_space<vmem>>, vector<1x1x128xf32>
    %37 = vector.shape_cast %36 : vector<1x1x128xf32> to vector<1x128xf32>
    %38 = vector.shape_cast %35 : vector<1x128xf32> to vector<1x1x128xf32>
    tpu.vector_store %arg4[%c0_17, %c0_18, %c0_19], %38 {strides = array<i32>} : memref<1x1x128xf32, #tpu.memory_space<vmem>>, vector<1x1x128xf32>,
    return
  }
  func.func @transform_0(%arg0: i32, %arg1: i32) -> (i32, i32, i32) {
    %c0_i32 = arith.constant 0 : i32
    %c0_i32_0 = arith.constant 0 : i32
    return %arg0, %arg1, %c0_i32 : i32, i32, i32
  }
  func.func @transform_1(%arg0: i32, %arg1: i32) -> (i32, i32, i32) {
    %c0_i32 = arith.constant 0 : i32
    %c0_i32_0 = arith.constant 0 : i32
    %c0_i32_1 = arith.constant 0 : i32
    return %arg0, %c0_i32, %c0_i32_0 : i32, i32, i32
  }
  func.func @transform_2(%arg0: i32, %arg1: i32) -> (i32, i32, i32) {
    %c0_i32 = arith.constant 0 : i32
    %c0_i32_0 = arith.constant 0 : i32
    %c0_i32_1 = arith.constant 0 : i32
    return %arg0, %c0_i32, %c0_i32_0 : i32, i32, i32
  }
}

</mosaic_0001>

<bundles_post_ra>
// kernel: tpu_custom_call.1
= control target key start
LH: loop header
LB: loop body
LE: loop exit
PB: predicated region body
PF: predicated region fallthrough
CT: control target
= control target key end

     0   :  { %8 = vsyncpa [#allocation3], 0  ;;  %s248_s0 = inlined_call_operand.hbm [shape: f32[1,32,128], index: 0, kind: input, shape index: {}]   ;;  %s249_s1 = inlined_call_operand.hbm [shape: f32[1,1,128], index: 1, kind: output, shape index: {0}]   ;;  %s250_s2 = inlined_call_operand.hbm [shape: f32[1,1,128], index: 2, kind: output, shape index: {1}]  }
   0x1   :  { %9 = vsyncpa [#allocation4], 0 }
   0x2   :  { %10 = vsyncpa [#allocation7], 0  ;;  %s191_s9 = smov [#allocation2]   ;;  %s119_s13 = scalar_lea.hbm %s248_s0, 512 }
   0x3   :  { %s16_s10 = sshll.u32 %s191_s9, 4  ;;  %p120_p0 = scmp.ne.s32.totalorder %s248_s0, %s119_s13  ;;  %s17_s10 = int_to_ptr.vmem [resolvable:$true] %s16_s10 }
   0x4   :  { %p123_p1 = scmp.lt.u32.totalorder %s119_s13, %s248_s0 }
   0x6   :  { %p125_p2 = pnand %p123_p1, %p120_p0 }
   0x8   :  { %128 = shalt.err (!%p125_p2)
}
   0x9   :  { %s129_s18 = scalar_lea.vmem %s17_s10, 512  ;;  %p134_p4 = scmp.lt.s32.totalorder %s17_s10, %s17_s10 }
   0xa   :  { %p130_p3 = scmp.ne.s32.totalorder %s17_s10, %s129_s18  ;;  %p135_p5 = scmp.lt.s32.totalorder %s129_s18, %s129_s18 }
   0xc   :  { %p136_p6 = por %p135_p5, %p134_p4 }
   0xe   :  { %p137_p7 = pnand %p136_p6, %p130_p3 }
  0x10   :  { %140 = shalt.err (!%p137_p7)
}
  0x11   :  { %s192_s19 = smov 128   ;;  %s193_s20 = smov 8  }
  0x12   :  { %22 = dma.hbm_to_vmem [thread:$0]  %s248_s0, 512, %s17_s10, [#allocation3], %s192_s19, %s192_s19, %s193_s20  }
  0x13   :  { %185 = dma.done.wait [#allocation3], 512  }
  0x14   :  { %186 = vsyncadd [#allocation3], 4294966784  ;;  %v194_v0 = vmov 0.0   ;;  %v32_v1 = vld [vmem:[#allocation2] sm:$0xff]  ;;  %v33_v2 = vld [vmem:[#allocation2 + $0x8] sm:$0xff]  ;;  %s195_s0 = smov [#allocation5]  }
  0x15   :  { %30 = vst [vmem:[#allocation5] sm:$0x1] %v194_v0  ;;  %31 = vst [vmem:[#allocation6] sm:$0x1] %v194_v0  ;;  %v34_v3 = vld [vmem:[#allocation2 + $0x10] sm:$0xff]  ;;  %v36_v4 = vadd.f32 %v33_v2, %v32_v1  ;;  %v35_v5 = vld [vmem:[#allocation2 + $0x18] sm:$0xff] }
  0x16   :  { %s90_s23 = sshll.u32 %s195_s0, 4  ;;  %s91_s23 = int_to_ptr.vmem [resolvable:$true] %s90_s23 }
  0x17   :  { %v37_v6 = vadd.f32 %v36_v4, %v34_v3  ;;  %s141_s24 = scalar_lea.vmem %s91_s23, 16  ;;  %s145_s25 = scalar_lea.vmem %s91_s23, 32 }
  0x18   :  { %p142_p8 = scmp.ne.s32.totalorder %s91_s23, %s141_s24  ;;  %p146_p9 = scmp.lt.s32.totalorder %s91_s23, %s91_s23 }
  0x19   :  { %v38_v7 = vadd.f32 %v37_v6, %v35_v5  ;;  %p147_p10 = scmp.lt.s32.totalorder %s145_s25, %s141_s24 }
  0x1b   :  { %v39_v8 = vrot.slane %v38_v7, 4  ;;  %p148_p11 = por %p147_p10, %p146_p9 }
  0x1c   :  { %v65_v14 = vld [vmem:[#allocation5] sm:$0x1] }
  0x1d   :  { %v40_v9 = vadd.f32 %v39_v8, %v38_v7  ;;  %p149_p12 = pnand %p148_p11, %p142_p8 }
  0x1f   :  { %v41_v10 = vrot.slane %v40_v9, 2 }
  0x21   :  { %v42_v11 = vadd.f32 %v41_v10, %v40_v9 }
  0x23   :  { %v43_v12 = vrot.slane %v42_v11, 1 }
  0x25   :  { %v44_v13 = vadd.f32 %v43_v12, %v42_v11 }
  0x27   :  { %v45_v15 = vmul.f32 0.03125, %v44_v13 }
  0x29   :  { %v67_v16 = vsub.f32 %v45_v15, %v65_v14  ;;  %v46_v17 = vsub.f32 %v32_v1, %v45_v15  ;;  %v47_v18 = vsub.f32 %v33_v2, %v45_v15  ;;  %v48_v19 = vsub.f32 %v34_v3, %v45_v15 }
  0x2a   :  { %v49_v20 = vsub.f32 %v35_v5, %v45_v15 }
  0x2b   :  { %v74_v21 = vadd.f32 %v67_v16, %v65_v14  ;;  %v50_v22 = vmul.f32 %v46_v17, %v46_v17  ;;  %v51_v23 = vmul.f32 %v47_v18, %v47_v18  ;;  %v52_v24 = vmul.f32 %v48_v19, %v48_v19 }
  0x2c   :  { %v53_v25 = vmul.f32 %v49_v20, %v49_v20 }
  0x2d   :  { %75 = vst [vmem:[#allocation5] sm:$0x1] %v74_v21  ;;  %v54_v26 = vadd.f32 %v51_v23, %v50_v22 }
  0x2e   :  { %152 = shalt.err (!%p149_p12)
}
  0x2f   :  { %s153_s28 = scalar_lea.hbm %s249_s1, 16 }
  0x30   :  { %p154_p13 = scmp.ne.s32.totalorder %s249_s1, %s153_s28  ;;  %p157_p0 = scmp.lt.u32.totalorder %s153_s28, %s249_s1 }
  0x32   :  { %p159_p1 = pnand %p157_p0, %p154_p13 }
  0x34   :  { %162 = shalt.err (!%p159_p1)
}
  0x35   :  { %93 = dma.vmem_to_hbm [thread:$0]  %s91_s23, 16, %s249_s1, [#allocation4]   ;;  %v55_v27 = vadd.f32 %v54_v26, %v52_v24  ;;  %v78_v32 = vmul.f32 %v67_v16, %v67_v16  ;;  %v76_v35 = vld [vmem:[#allocation6] sm:$0x1] }
  0x36   :  { %s196_s7 = smov [#allocation6]  }
  0x37   :  { %v56_v28 = vadd.f32 %v55_v27, %v53_v25  ;;  %v81_v36 = vmul.f32 0.0, %v78_v32  ;;  %s100_s8 = sshll.u32 %s196_s7, 4  ;;  %s101_s8 = int_to_ptr.vmem [resolvable:$true] %s100_s8 }
  0x38   :  { %s163_s9 = scalar_lea.vmem %s101_s8, 16  ;;  %s167_s1 = scalar_lea.vmem %s101_s8, 32 }
  0x39   :  { %v57_v29 = vrot.slane %v56_v28, 4  ;;  %p164_p2 = scmp.ne.s32.totalorder %s101_s8, %s163_s9  ;;  %p168_p3 = scmp.lt.s32.totalorder %s101_s8, %s101_s8 }
  0x3a   :  { %p169_p4 = scmp.lt.s32.totalorder %s167_s1, %s163_s9 }
  0x3b   :  { %v58_v30 = vadd.f32 %v57_v29, %v56_v28 }
  0x3c   :  { %p170_p5 = por %p169_p4, %p168_p3 }
  0x3d   :  { %v59_v31 = vrot.slane %v58_v30, 2 }
  0x3e   :  { %p171_p6 = pnand %p170_p5, %p164_p2 }
  0x3f   :  { %v60_v33 = vadd.f32 %v59_v31, %v58_v30 }
  0x41   :  { %v61_v34 = vrot.slane %v60_v33, 1 }
  0x43   :  { %v62_v37 = vadd.f32 %v61_v34, %v60_v33 }
  0x45   :  { %v77_v38 = vadd.f32 %v76_v35, %v62_v37 }
  0x47   :  { %v82_v39 = vadd.f32 %v81_v36, %v77_v38 }
  0x49   :  { %83 = vst [vmem:[#allocation6] sm:$0x1] %v82_v39 }
  0x4a   :  { %174 = shalt.err (!%p171_p6)
}
  0x4b   :  { %s175_s12 = scalar_lea.hbm %s250_s2, 16 }
  0x4c   :  { %p176_p7 = scmp.ne.s32.totalorder %s250_s2, %s175_s12  ;;  %p179_p8 = scmp.lt.u32.totalorder %s175_s12, %s250_s2 }
  0x4e   :  { %p181_p9 = pnand %p179_p8, %p176_p7 }
  0x50   :  { %184 = shalt.err (!%p181_p9)
}
  0x51   :  { %103 = dma.vmem_to_hbm [thread:$0]  %s101_s8, 16, %s250_s2, [#allocation7]  }
  0x52   :  { %187 = dma.done.wait [#allocation4], 16  }
  0x53   :  { %188 = vsyncadd [#allocation4], 4294967280 }
  0x54   :  { %189 = dma.done.wait [#allocation7], 16  }
  0x55   :  { %190 = vsyncadd [#allocation7], 4294967280 }
  0x56   :  { %110 = vsyncpa [#allocation3], 1 }
  0x57   :  { %111 = vsyncpa [#allocation4], 1 }
  0x58   :  { %112 = vsyncpa [#allocation7], 1 }

</bundles_post_ra>
